<compile_context>
chip_gen: v5e
topology: v5e:2x2
jax: 0.10.0
libtpu: 0.0.40
codegen_flags: <defaults>
</compile_context>

<pallas_src>
import functools

import jax
import jax.numpy as jnp
from jax import lax
from jax.experimental import pallas as pl
from jax.experimental.pallas import tpu as pltpu


def _round_up(x, m):
    return ((x + m - 1) // m) * m


def _make_kernel(TB, D, L, B):
    """Build the per-tile kernel with static shape/batch parameters."""

    def kernel(rep_a_ref, rep_b_ref, wa_ref, wb_ref, wd_ref, bias_ref,
               labels_ref, out_ref):
        # Native-dtype tiles straight into the MXU (bf16 or f32).
        a = rep_a_ref[...]                                   # [TB, D]
        b = rep_b_ref[...]                                   # [TB, D]

        # |a - b| in f32 (v5e VPU has no bf16 path), cast back for the MXU.
        d32 = jnp.abs(a.astype(jnp.float32) - b.astype(jnp.float32))
        d = d32.astype(a.dtype)

        # concat([a, b, |a-b|]) @ W.T  ==  a@Wa + b@Wb + |a-b|@Wd
        logits = (jnp.dot(a, wa_ref[...], preferred_element_type=jnp.float32)
                  + jnp.dot(b, wb_ref[...], preferred_element_type=jnp.float32)
                  + jnp.dot(d, wd_ref[...], preferred_element_type=jnp.float32)
                  + bias_ref[...].astype(jnp.float32))       # [TB, L]

        # Numerically-stable log-softmax cross entropy (all f32).
        m = jnp.max(logits, axis=-1, keepdims=True)          # [TB, 1]
        lse = m + jnp.log(jnp.sum(jnp.exp(logits - m), axis=-1, keepdims=True))

        lbl = labels_ref[...]                                # [TB, 1] int32
        col = lax.broadcasted_iota(jnp.int32, (TB, L), 1)
        onehot = (col == lbl).astype(jnp.float32)            # [TB, L]
        picked = jnp.sum(logits * onehot, axis=-1, keepdims=True)  # [TB, 1]

        # Mask rows of the (possibly ragged) last tile.
        row = (lax.broadcasted_iota(jnp.int32, (TB, 1), 0)
               + pl.program_id(0) * TB)
        valid = row < B
        per_row = jnp.where(valid, lse - picked, 0.0)        # [TB, 1]

        partial = jnp.sum(per_row)                           # scalar
        # Lane-dense, unmasked full-block store of the partial sum.
        out_ref[...] = jnp.full((1, 8, 128), partial, dtype=jnp.float32)

    return kernel


def softmax_loss(rep_a, rep_b, weight, bias, labels, *, tile_b=512):
    """SoftmaxLoss head.

    rep_a, rep_b : [B, D]  (f32 or bf16 — kept in native dtype)
    weight       : [L, 3*D]  (PyTorch nn.Linear convention)
    bias         : [L]
    labels       : [B] int
    """
    B, D = rep_a.shape
    L = bias.shape[0]
    assert rep_b.shape == (B, D)
    assert weight.shape == (L, 3 * D)

    # Batch tile: multiple of 8, capped at tile_b, no larger than needed.
    TB = min(int(tile_b), _round_up(B, 8))
    TB = max(8, (TB // 8) * 8)
    num_tiles = -(-B // TB)

    cdt = rep_a.dtype
    wt = weight.T.astype(cdt)                       # [3D, L]
    wa, wb, wd = wt[:D], wt[D:2 * D], wt[2 * D:]    # three [D, L] slabs
    bias2 = bias.reshape(1, L).astype(jnp.float32)
    labels2 = labels.reshape(B, 1).astype(jnp.int32)

    kernel = _make_kernel(TB, D, L, B)

    partials = pl.pallas_call(
        kernel,
        out_shape=jax.ShapeDtypeStruct((num_tiles, 8, 128), jnp.float32),
        grid=(num_tiles,),
        in_specs=[
            pl.BlockSpec((TB, D), lambda i: (i, 0)),   # rep_a tile (pipelined)
            pl.BlockSpec((TB, D), lambda i: (i, 0)),   # rep_b tile (pipelined)
            pl.BlockSpec((D, L), lambda i: (0, 0)),    # Wa (resident)
            pl.BlockSpec((D, L), lambda i: (0, 0)),    # Wb (resident)
            pl.BlockSpec((D, L), lambda i: (0, 0)),    # Wd (resident)
            pl.BlockSpec((1, L), lambda i: (0, 0)),    # bias (resident)
            pl.BlockSpec((TB, 1), lambda i: (i, 0)),   # labels tile
        ],
        out_specs=pl.BlockSpec((1, 8, 128), lambda i: (i, 0, 0)),
        compiler_params=pltpu.CompilerParams(
            dimension_semantics=("parallel",)),
    )(rep_a, rep_b, wa, wb, wd, bias2, labels2)

    # Each block is filled with its tile's partial sum; take one lane per tile.
    return jnp.sum(partials[:, 0, 0]) / jnp.float32(B)


def _reference_loss(rep_a, rep_b, weight, bias, labels):
    feats = jnp.concatenate([rep_a, rep_b, jnp.abs(rep_a - rep_b)], axis=1)
    logits = feats @ weight.T + bias
    logz = jax.nn.logsumexp(logits, axis=-1)
    picked = jnp.take_along_axis(logits, labels[:, None], axis=-1)[:, 0]
    return jnp.mean(logz - picked)


if __name__ == "__main__":
    # Small shapes consistent with the module: batch=8, embedding dim=32, 3 labels.
    B, D, L = 8, 32, 3
    key = jax.random.PRNGKey(0)
    k_a, k_b, k_w, k_bias, k_lbl = jax.random.split(key, 5)

    rep_a = jax.random.normal(k_a, (B, D), dtype=jnp.float32)
    rep_b = jax.random.normal(k_b, (B, D), dtype=jnp.float32)

    # Deterministic nn.Linear(3*D, L) parameter init (uniform, like PyTorch default).
    bound = 1.0 / jnp.sqrt(3.0 * D)
    weight = jax.random.uniform(k_w, (L, 3 * D), minval=-bound, maxval=bound,
                                dtype=jnp.float32)
    bias = jax.random.uniform(k_bias, (L,), minval=-bound, maxval=bound,
                              dtype=jnp.float32)
    labels = jax.random.randint(k_lbl, (B,), 0, L, dtype=jnp.int32)

    # --- f32, single tile ---
    loss = softmax_loss(rep_a, rep_b, weight, bias, labels)
    jax.block_until_ready(loss)
    ref = _reference_loss(rep_a, rep_b, weight, bias, labels)
    assert jnp.allclose(loss, ref, rtol=1e-5, atol=1e-5), (loss, ref)

    # --- bf16 reps, ragged batch split across multiple pipelined tiles ---
    B2 = 20
    rep_a2 = jax.random.normal(k_a, (B2, D), jnp.float32).astype(jnp.bfloat16)
    rep_b2 = jax.random.normal(k_b, (B2, D), jnp.float32).astype(jnp.bfloat16)
    labels2 = jax.random.randint(k_lbl, (B2,), 0, L, dtype=jnp.int32)
    loss2 = softmax_loss(rep_a2, rep_b2, weight, bias, labels2, tile_b=8)
    jax.block_until_ready(loss2)
    ref2 = _reference_loss(rep_a2.astype(jnp.float32),
                           rep_b2.astype(jnp.float32), weight, bias, labels2)
    assert jnp.allclose(loss2, ref2, rtol=5e-2, atol=5e-2), (loss2, ref2)

    # TODO(synk): the SentenceTransformer encoder producing 'cls_token_embeddings'
    # (and the optional concatenation_sent_multiplication branch) are outside
    # this kernel; it implements the default-flag classifier + CE loss head.
    print("KERNEL_OK")
</pallas_src>

<mosaic_0001>
module attributes {stable_mosaic.version = 11 : i64} {
  func.func @kernel(%arg0: i32, %arg1: memref<8x32xf32, #tpu.memory_space<vmem>>, %arg2: memref<8x32xf32, #tpu.memory_space<vmem>>, %arg3: memref<32x3xf32, #tpu.memory_space<vmem>>, %arg4: memref<32x3xf32, #tpu.memory_space<vmem>>, %arg5: memref<32x3xf32, #tpu.memory_space<vmem>>, %arg6: memref<1x3xf32, #tpu.memory_space<vmem>>, %arg7: memref<8x1xi32, #tpu.memory_space<vmem>>, %arg8: memref<1x8x128xf32, #tpu.memory_space<vmem>>) attributes {dimension_semantics = [#tpu.dimension_semantics<parallel>], iteration_bounds = array<i64: 1>, scalar_prefetch = 0 : i64, scratch_operands = 0 : i64, tpu.core_type = #tpu.core_type<tc>, window_params = [{transform_indices = @transform_0, window_bounds = array<i64: 8, 32>}, {transform_indices = @transform_1, window_bounds = array<i64: 8, 32>}, {pipeline_mode = #tpu.pipeline_mode<synchronous>, transform_indices = @transform_2, window_bounds = array<i64: 32, 3>}, {pipeline_mode = #tpu.pipeline_mode<synchronous>, transform_indices = @transform_3, window_bounds = array<i64: 32, 3>}, {pipeline_mode = #tpu.pipeline_mode<synchronous>, transform_indices = @transform_4, window_bounds = array<i64: 32, 3>}, {pipeline_mode = #tpu.pipeline_mode<synchronous>, transform_indices = @transform_5, window_bounds = array<i64: 1, 3>}, {transform_indices = @transform_6, window_bounds = array<i64: 8, 1>}, {transform_indices = @transform_7, window_bounds = array<i64: 1, 8, 128>}]} {
    %c0 = arith.constant 0 : index
    %c0_0 = arith.constant 0 : index
    %0 = vector.load %arg1[%c0, %c0_0] : memref<8x32xf32, #tpu.memory_space<vmem>>, vector<8x32xf32>
    %c0_1 = arith.constant 0 : index
    %c0_2 = arith.constant 0 : index
    %1 = vector.load %arg2[%c0_1, %c0_2] : memref<8x32xf32, #tpu.memory_space<vmem>>, vector<8x32xf32>
    %2 = arith.subf %0, %1 : vector<8x32xf32>
    %3 = math.absf %2 : vector<8x32xf32>
    %c0_3 = arith.constant 0 : index
    %c0_4 = arith.constant 0 : index
    %4 = vector.load %arg3[%c0_3, %c0_4] : memref<32x3xf32, #tpu.memory_space<vmem>>, vector<32x3xf32>
    %cst = arith.constant dense<0.000000e+00> : vector<8x3xf32>
    %5 = tpu.matmul %0, %4, %cst {dimension_numbers = #tpu.dot_dimension_numbers<[1], [0], [0], [1], [0, 0, 1, 1], [], []>} : vector<8x32xf32>, vector<32x3xf32>, vector<8x3xf32> -> vector<8x3xf32>
    %c0_5 = arith.constant 0 : index
    %c0_6 = arith.constant 0 : index
    %6 = vector.load %arg4[%c0_5, %c0_6] : memref<32x3xf32, #tpu.memory_space<vmem>>, vector<32x3xf32>
    %cst_7 = arith.constant dense<0.000000e+00> : vector<8x3xf32>
    %7 = tpu.matmul %1, %6, %cst_7 {dimension_numbers = #tpu.dot_dimension_numbers<[1], [0], [0], [1], [0, 0, 1, 1], [], []>} : vector<8x32xf32>, vector<32x3xf32>, vector<8x3xf32> -> vector<8x3xf32>
    %8 = arith.addf %5, %7 : vector<8x3xf32>
    %c0_8 = arith.constant 0 : index
    %c0_9 = arith.constant 0 : index
    %9 = vector.load %arg5[%c0_8, %c0_9] : memref<32x3xf32, #tpu.memory_space<vmem>>, vector<32x3xf32>
    %cst_10 = arith.constant dense<0.000000e+00> : vector<8x3xf32>
    %10 = tpu.matmul %3, %9, %cst_10 {dimension_numbers = #tpu.dot_dimension_numbers<[1], [0], [0], [1], [0, 0, 1, 1], [], []>} : vector<8x32xf32>, vector<32x3xf32>, vector<8x3xf32> -> vector<8x3xf32>
    %11 = arith.addf %8, %10 : vector<8x3xf32>
    %c0_11 = arith.constant 0 : index
    %c0_12 = arith.constant 0 : index
    %12 = vector.load %arg6[%c0_11, %c0_12] : memref<1x3xf32, #tpu.memory_space<vmem>>, vector<1x3xf32>
    %13 = vector.broadcast %12 : vector<1x3xf32> to vector<8x3xf32>
    %14 = arith.addf %11, %13 : vector<8x3xf32>
    %cst_13 = arith.constant dense<0xFF800000> : vector<8xf32>
    %15 = vector.multi_reduction <maximumf>, %14, %cst_13 [1] : vector<8x3xf32> to vector<8xf32>
    %16 = vector.shape_cast %15 : vector<8xf32> to vector<8x1xf32>
    %17 = vector.broadcast %16 : vector<8x1xf32> to vector<8x3xf32>
    %18 = arith.subf %14, %17 : vector<8x3xf32>
    %19 = math.exp %18 : vector<8x3xf32>
    %cst_14 = arith.constant dense<0.000000e+00> : vector<8xf32>
    %20 = vector.multi_reduction <add>, %19, %cst_14 [1] : vector<8x3xf32> to vector<8xf32>
    %21 = vector.shape_cast %20 : vector<8xf32> to vector<8x1xf32>
    %22 = math.log %21 : vector<8x1xf32>
    %23 = arith.addf %16, %22 : vector<8x1xf32>
    %c0_15 = arith.constant 0 : index
    %c0_16 = arith.constant 0 : index
    %24 = vector.load %arg7[%c0_15, %c0_16] : memref<8x1xi32, #tpu.memory_space<vmem>>, vector<8x1xi32>
    %25 = tpu.iota {dimensions = array<i32: 1>} : vector<8x3xi32>
    %26 = vector.broadcast %24 : vector<8x1xi32> to vector<8x3xi32>
    %27 = arith.cmpi eq, %25, %26 : vector<8x3xi32>
    %28 = arith.extui %27 : vector<8x3xi1> to vector<8x3xi32>
    %29 = arith.sitofp %28 : vector<8x3xi32> to vector<8x3xf32>
    %30 = arith.mulf %14, %29 : vector<8x3xf32>
    %cst_17 = arith.constant dense<0.000000e+00> : vector<8xf32>
    %31 = vector.multi_reduction <add>, %30, %cst_17 [1] : vector<8x3xf32> to vector<8xf32>
    %32 = vector.shape_cast %31 : vector<8xf32> to vector<8x1xf32>
    %33 = tpu.iota {dimensions = array<i32: 0>} : vector<8x1xi32>
    %c8_i32 = arith.constant 8 : i32
    %34 = arith.muli %arg0, %c8_i32 : i32
    %35 = vector.broadcast %34 : i32 to vector<8x1xi32>
    %36 = arith.addi %33, %35 : vector<8x1xi32>
    %c8_i32_18 = arith.constant 8 : i32
    %37 = vector.broadcast %c8_i32_18 : i32 to vector<8x1xi32>
    %38 = arith.cmpi slt, %36, %37 : vector<8x1xi32>
    %39 = arith.subf %23, %32 : vector<8x1xf32>
    %cst_19 = arith.constant 0.000000e+00 : f32
    %40 = vector.broadcast %cst_19 : f32 to vector<8x1xf32>
    %41 = arith.select %38, %39, %40 : vector<8x1xi1>, vector<8x1xf32>
    %42 = vector.shape_cast %41 : vector<8x1xf32> to vector<1x8x1xf32>
    %cst_20 = arith.constant dense<0.000000e+00> : vector<1xf32>
    %43 = vector.multi_reduction <add>, %42, %cst_20 [1, 2] : vector<1x8x1xf32> to vector<1xf32>
    %44 = vector.shape_cast %43 : vector<1xf32> to vector<1x1x1xf32>
    %45 = vector.extract %44[0, 0, 0] : f32 from vector<1x1x1xf32>
    %46 = vector.broadcast %45 : f32 to vector<1x8x128xf32>
    %c0_21 = arith.constant 0 : index
    %c0_22 = arith.constant 0 : index
    %c0_23 = arith.constant 0 : index
    %47 = vector.load %arg8[%c0_21, %c0_22, %c0_23] : memref<1x8x128xf32, #tpu.memory_space<vmem>>, vector<1x8x128xf32>
    tpu.vector_store %arg8[%c0_21, %c0_22, %c0_23], %46 {strides = array<i32>} : memref<1x8x128xf32, #tpu.memory_space<vmem>>, vector<1x8x128xf32>,
    return
  }
  func.func @transform_0(%arg0: i32) -> (i32, i32) {
    %c0_i32 = arith.constant 0 : i32
    %c0_i32_0 = arith.constant 0 : i32
    return %arg0, %c0_i32 : i32, i32
  }
  func.func @transform_1(%arg0: i32) -> (i32, i32) {
    %c0_i32 = arith.constant 0 : i32
    %c0_i32_0 = arith.constant 0 : i32
    return %arg0, %c0_i32 : i32, i32
  }
  func.func @transform_2(%arg0: i32) -> (i32, i32) {
    %c0_i32 = arith.constant 0 : i32
    %c0_i32_0 = arith.constant 0 : i32
    %c0_i32_1 = arith.constant 0 : i32
    return %c0_i32, %c0_i32_0 : i32, i32
  }
  func.func @transform_3(%arg0: i32) -> (i32, i32) {
    %c0_i32 = arith.constant 0 : i32
    %c0_i32_0 = arith.constant 0 : i32
    %c0_i32_1 = arith.constant 0 : i32
    return %c0_i32, %c0_i32_0 : i32, i32
  }
  func.func @transform_4(%arg0: i32) -> (i32, i32) {
    %c0_i32 = arith.constant 0 : i32
    %c0_i32_0 = arith.constant 0 : i32
    %c0_i32_1 = arith.constant 0 : i32
    return %c0_i32, %c0_i32_0 : i32, i32
  }
  func.func @transform_5(%arg0: i32) -> (i32, i32) {
    %c0_i32 = arith.constant 0 : i32
    %c0_i32_0 = arith.constant 0 : i32
    %c0_i32_1 = arith.constant 0 : i32
    return %c0_i32, %c0_i32_0 : i32, i32
  }
  func.func @transform_6(%arg0: i32) -> (i32, i32) {
    %c0_i32 = arith.constant 0 : i32
    %c0_i32_0 = arith.constant 0 : i32
    return %arg0, %c0_i32 : i32, i32
  }
  func.func @transform_7(%arg0: i32) -> (i32, i32, i32) {
    %c0_i32 = arith.constant 0 : i32
    %c0_i32_0 = arith.constant 0 : i32
    %c0_i32_1 = arith.constant 0 : i32
    return %arg0, %c0_i32, %c0_i32_0 : i32, i32, i32
  }
}

</mosaic_0001>

<bundles_post_ra>
// kernel: tpu_custom_call.1
= control target key start
LH: loop header
LB: loop body
LE: loop exit
PB: predicated region body
PF: predicated region fallthrough
CT: control target
= control target key end

     0   :  { %vm39_vm0 = vcmask 261120   ;;  %s320_s0 = inlined_call_operand.vmem [shape: f32[8,32], index: 0, kind: input, shape index: {}]   ;;  %s321_s1 = inlined_call_operand.vmem [shape: f32[8,32], index: 1, kind: input, shape index: {}]   ;;  %s322_s2 = inlined_call_operand.vmem [shape: f32[32,3], index: 2, kind: input, shape index: {}]   ;;  %s323_s3 = inlined_call_operand.vmem [shape: f32[32,3], index: 3, kind: input, shape index: {}]   ;;  %s324_s4 = inlined_call_operand.vmem [shape: f32[32,3], index: 4, kind: input, shape index: {}]   ;;  %s325_s5 = inlined_call_operand.vmem [shape: f32[1,3], index: 5, kind: input, shape index: {}]   ;;  %s326_s6 = inlined_call_operand.vmem [shape: s32[8,1], index: 6, kind: input, shape index: {}]   ;;  %s327_s7 = inlined_call_operand.hbm [shape: f32[1,8,128], index: 7, kind: output, shape index: {}]  }
   0x1   :  { %v89_v0 = vld [vmem:[%s324_s4 + $0x18] sm:$0xff]  ;;  %v88_v1 = vld [vmem:[%s324_s4 + $0x10] sm:$0xff]  ;;  %v87_v5 = vld [vmem:[%s324_s4 + $0x8] sm:$0xff] }
   0x2   :  { %v38_v2 = vld [vmem:[%s323_s3 + $0x18] sm:$0xff]  ;;  %105 = vmatpush.msra.mxu2 %v89_v0  ;;  %v37_v4 = vld [vmem:[%s323_s3 + $0x10] sm:$0xff]  ;;  %v27_v7 = vld [vmem:[%s320_s0] sm:$0xff] }
   0x3   :  { %55 = vmatpush.msra.mxu0 %v38_v2  ;;  %v34_v3 = vld [vmem:[%s322_s2 + $0x18] sm:$0xff]  ;;  %v33_v6 = vld [vmem:[%s322_s2 + $0x10] sm:$0xff]  ;;  %v28_v8 = vld [vmem:[%s321_s1] sm:$0xff] }
   0x4   :  { %78 = vmatpush.msra.mxu1 %v34_v3  ;;  %106 = vmatpush.msra.mxu2 %v88_v1  ;;  %v36_v9 = vld [vmem:[%s323_s3 + $0x8] sm:$0xff]  ;;  %v86_v11 = vld [vmem:[%s324_s4] sm:$0xff]  ;;  %v29_v12 = vsub.f32 %v27_v7, %v28_v8 }
   0x5   :  { %56 = vmatpush.msra.mxu0 %v37_v4  ;;  %v32_v10 = vld [vmem:[%s322_s2 + $0x8] sm:$0xff]  ;;  %v35_v13 = vld [vmem:[%s323_s3] sm:$0xff] }
   0x6   :  { %79 = vmatpush.msra.mxu1 %v33_v6  ;;  %107 = vmatpush.msra.mxu2 %v87_v5  ;;  %v31_v14 = vld [vmem:[%s322_s2] sm:$0xff] }
   0x7   :  { %57 = vmatpush.msra.mxu0 %v36_v9 }
   0x8   :  { %12 = vsyncpa [#allocation3], 0  ;;  %v30_v15 = vand.u32 2147483647, %v29_v12  ;;  %80 = vmatpush.msra.mxu1 %v32_v10  ;;  %108 = vmatpush.msra.mxu2 %v86_v11  ;;  %v223_v16 = vmov 0   ;;  %vm119_vm1 = vcmask 23552   ;;  %v133_v31 = vlaneseq }
   0x9   :  { %58 = vmatpush.msra.mxu0 %v35_v13  ;;  %191 = vset.pattern.permute.xlu0 %v223_v16  ;;  %v192_v20 = vld [vmem:[%s325_s5] ss:$0 sm:$0xff]  ;;  %v224_v34 = vmov 0.0   ;;  %vm153_vm3 = vcmask 7168   ;;  %s225_s5 = smov [#allocation2]   ;;  %s173_s30 = sshll.u32 %s327_s7, 4  ;;  %s174_s30 = int_to_ptr.hbm [resolvable:$true] %s173_s30 }
   0xa   :  { %184 = vmatmul.msk.f32.vlgmr.msra.gmra.mxu2 %vm39_vm0, %v30_v15  ;;  %81 = vmatpush.msra.mxu1 %v31_v14  ;;  %v132_v25 = vld [vmem:[%s326_s6] sm:$0xff]  ;;  %v134_v32 = vand.u32 127, %v133_v31  ;;  %s171_s6 = sshll.u32 %s225_s5, 4  ;;  %s172_s6 = int_to_ptr.vmem [resolvable:$true] %s171_s6 }
   0xb   :  { %182 = vmatmul.msk.f32.vlgmr.msra.gmra.mxu0 %vm39_vm0, %v28_v8  ;;  %183 = vmatmul.msk.f32.vlgmr.msra.gmra.mxu1 %vm39_vm0, %v27_v7 }
  0x88   :  { %v60_v17 = vpop.f32.mrf.mxu0  ;;  %v83_v18 = vpop.f32.mrf.mxu1 }
  0x89   :  { %v84_v19 = vadd.f32 %v83_v18, %v60_v17 }
  0x8d   :  { %v110_v21 = vpop.f32.mrf.mxu2 }
  0x8e   :  { %v113_v22 = vadd.f32 %v110_v21, %v84_v19 }
  0x90   :  { %v118_v23 = vadd.f32 %v192_v20, %v113_v22 }
  0x92   :  { %v120_v24 = vsel %vm119_vm1, %v118_v23, -inf }
  0x93   :  { %121 = vmax.xlane.f32.xlu0 %v120_v24 }
  0xa7   :  { %136 = vperm.xlu0 %191, %v132_v25  }
 0x106   :  { %v122_v26 = vpop.xlane.xlu0 %121 }
 0x107   :  { %v123_v27 = vsub.f32 %v118_v23, %v122_v26 }
 0x109   :  { %v124_v28 = vmul.f32 1.442695, %v123_v27 }
 0x10b   :  { %193 = vpow2.f32 %v124_v28 }
 0x111   :  { %v194_v29 = vpop.eup %193 }
 0x112   :  { %v126_v30 = vsel %vm119_vm1, %v194_v29, 0.0 }
 0x113   :  { %127 = vadd.xlane.f32.xlu1 %v126_v30 }
 0x119   :  { %v137_v33 = vpop.permute.xlu0 %136 }
 0x11a   :  { %vm138_vm2 = vcmp.eq.s32.totalorder %v134_v32, %v137_v33 }
 0x11b   :  { %v185_v35 = vsel %vm138_vm2, 1.0, %v224_v34 }
 0x11c   :  { %v141_v36 = vmul.f32 %v185_v35, %v118_v23 }
 0x11e   :  { %v142_v37 = vsel %vm119_vm1, %v141_v36, 0.0 }
 0x11f   :  { %143 = vadd.xlane.f32.xlu1 %v142_v37 }
 0x186   :  { %v128_v38 = vpop.xlane.xlu1 %127 }
 0x187   :  { %195 = vlog2.f32 %v128_v38 }
 0x18d   :  { %v196_v39 = vpop.eup %195 }
 0x18e   :  { %v130_v40 = vmul.f32 0.6931472, %v196_v39 }
 0x190   :  { %v131_v41 = vadd.f32 %v130_v40, %v122_v26 }
 0x192   :  { %v144_v42 = vpop.xlane.xlu1 %143 }
 0x193   :  { %v151_v43 = vsub.f32 %v131_v41, %v144_v42 }
 0x195   :  { %v154_v44 = vsel %vm153_vm3, %v151_v43, 0.0 }
 0x196   :  { %155 = vadd.xlane.f32.xlu2 %v154_v44 }
 0x209   :  { %v156_v45 = vpop.xlane.xlu2 %155 }
 0x20a   :  { %v157_v46 = vrot.slane %v156_v45, 4 }
 0x20c   :  { %v158_v47 = vadd.f32 %v157_v46, %v156_v45 }
 0x20e   :  { %v159_v48 = vrot.slane %v158_v47, 2 }
 0x210   :  { %v160_v49 = vadd.f32 %v159_v48, %v158_v47 }
 0x212   :  { %v161_v50 = vrot.slane %v160_v49, 1 }
 0x214   :  { %v162_v51 = vadd.f32 %v161_v50, %v160_v49 }
 0x216   :  { %186 = vpush %v162_v51 }
 0x247   :  { %s187_s8 = spop %186 }
 0x248   :  { %v164_v52 = vstv %s187_s8 }
 0x249   :  { %165 = vst [vmem:[#allocation2] sm:$0xff] %v164_v52 }
 0x24a   :  { %176 = dma.vmem_to_hbm [thread:$0]  %s172_s6, 128, %s174_s30, [#allocation3]  }
 0x24b   :  { %221 = dma.done.wait [#allocation3], 128  }
 0x24c   :  { %222 = vsyncadd [#allocation3], 4294967168 }
 0x24d   :  { %181 = vsyncpa [#allocation3], 1 }

</bundles_post_ra>
